<compile_context>
chip_gen: v7x
topology: tpu7x:2x2x1
jax: 0.10.0
libtpu: 0.0.40
codegen_flags: <defaults>
</compile_context>

<pallas_src>
import jax
import jax.numpy as jnp
from jax.experimental import pallas as pl
from jax.experimental.pallas import tpu as pltpu


def _round_up(x, m):
    return (x + m - 1) // m * m


def _kernel(lhs_ref, w_ref, b_ref, m_ref, o_ref):
    # lhs_ref: (TR, Kpad)    im2col patch rows (K and tail rows zero-padded)
    # w_ref  : (Kpad, Fpad)  flattened conv weights (zero-padded)
    # b_ref  : (1, Fpad)     conv bias (zero-padded)
    # m_ref  : (NBpad, TR)   pooling matrix: 1/(H*W) one-hot per batch, 0 on pad rows
    # o_ref  : (NBpad, Fpad) per-batch spatial mean, accumulated over row tiles
    t = pl.program_id(1)

    # Conv: single MXU matmul with K = kh*kw*Cin packed lane-dense, bias + ReLU on the VPU.
    y = jnp.dot(lhs_ref[...], w_ref[...], preferred_element_type=jnp.float32)
    y = jnp.maximum(y + b_ref[...], 0.0)                       # (TR, Fpad)

    # AveragingModule: mask + per-batch segmentation + 1/(H*W) folded into one MXU matmul.
    part = jnp.dot(m_ref[...], y, preferred_element_type=jnp.float32)   # (NBpad, Fpad)

    @pl.when(t == 0)
    def _():
        o_ref[...] = part

    @pl.when(t != 0)
    def _():
        o_ref[...] += part


def phase_classifier_forward(x_nchw, w_hwio, b, *, batch_tile=None, row_tile=512):
    """x_nchw: (N, Cin, H, W); w_hwio: (kh, kw, Cin, F); b: (F,) -> (N, F)."""
    N, Cin, H, W = x_nchw.shape
    kh, kw, _, F = w_hwio.shape
    # TODO(synk): pad = kh // 2 reproduces PyTorch padding=1 / SAME only for odd kernels.
    pad = kh // 2
    HW = H * W
    K = kh * kw * Cin
    Kpad = _round_up(K, 128)            # lane-dense contraction dim
    Fpad = _round_up(F, 128)            # lane-dense output channels

    NB = N if batch_tile is None else max(1, min(batch_tile, N))
    n_groups = -(-N // NB)              # batch groups ("parallel" axis -> v7x 2 TCs)
    NBpad = _round_up(NB, 8)            # sublane-dense output rows
    Npad = n_groups * NB

    Lg = NB * HW                        # conv-output rows per batch group
    TR = min(_round_up(Lg, 128), _round_up(row_tile, 128))   # row tile ("arbitrary" axis)
    Lg_pad = _round_up(Lg, TR)
    n_row_tiles = Lg_pad // TR

    # ---- host-side layout prep: im2col + lane-dense padding (tiny: ~k*k x input bytes) ----
    x_nhwc = jnp.transpose(x_nchw, (0, 2, 3, 1))                        # (N, H, W, Cin)
    xp = jnp.pad(x_nhwc, ((0, 0), (pad, pad), (pad, pad), (0, 0)))      # (N, Hp, Wp, Cin)
    patches = jnp.concatenate(
        [xp[:, dy:dy + H, dx:dx + W, :] for dy in range(kh) for dx in range(kw)],
        axis=-1)                                                        # (N, H, W, K) (dy,dx,cin)
    lhs = patches.reshape(N, HW, K)
    lhs = jnp.pad(lhs, ((0, Npad - N), (0, 0), (0, Kpad - K)))          # pad batches + K lanes
    lhs = lhs.reshape(n_groups, Lg, Kpad)
    lhs = jnp.pad(lhs, ((0, 0), (0, Lg_pad - Lg), (0, 0)))              # pad rows to row tiles
    lhs = lhs.reshape(n_groups * Lg_pad, Kpad)

    # (kh, kw, Cin, F) -> (K, F): same (dy, dx, cin) order as the patch concat above.
    w_flat = jnp.pad(w_hwio.reshape(K, F), ((0, Kpad - K), (0, Fpad - F)))   # (Kpad, Fpad)
    b_pad = jnp.pad(b, (0, Fpad - F)).reshape(1, Fpad)

    # Pooling matrix: M[i, r] = 1/(H*W) iff row r belongs to local batch i (pad rows get 0).
    r = jnp.arange(Lg_pad)
    M = ((r[None, :] // HW) == jnp.arange(NBpad)[:, None]) & (r[None, :] < Lg)
    M = M.astype(jnp.float32) * (1.0 / float(HW))                       # (NBpad, Lg_pad)
    M = jnp.broadcast_to(M[None], (n_groups, NBpad, Lg_pad)).reshape(
        n_groups * NBpad, Lg_pad)

    out = pl.pallas_call(
        _kernel,
        out_shape=jax.ShapeDtypeStruct((n_groups * NBpad, Fpad), jnp.float32),
        grid_spec=pltpu.PrefetchScalarGridSpec(
            num_scalar_prefetch=0,
            grid=(n_groups, n_row_tiles),
            in_specs=[
                pl.BlockSpec((TR, Kpad), lambda g, t: (g * n_row_tiles + t, 0)),
                pl.BlockSpec((Kpad, Fpad), lambda g, t: (0, 0)),
                pl.BlockSpec((1, Fpad), lambda g, t: (0, 0)),
                pl.BlockSpec((NBpad, TR), lambda g, t: (g, t)),
            ],
            out_specs=pl.BlockSpec((NBpad, Fpad), lambda g, t: (g, 0)),
        ),
        compiler_params=pltpu.CompilerParams(
            dimension_semantics=("parallel", "arbitrary")),
    )(lhs, w_flat, b_pad, M)

    out = out.reshape(n_groups, NBpad, Fpad)[:, :NB, :].reshape(Npad, Fpad)
    return out[:N, :F]


# ---------------------------------------------------------------------------
# Pure-JAX reference (matches PyTorch: Conv2d(pad=1) -> ReLU -> mean over (H, W))
# ---------------------------------------------------------------------------
def _reference(x_nchw, w_hwio, b):
    x_nhwc = jnp.transpose(x_nchw, (0, 2, 3, 1))
    y = jax.lax.conv_general_dilated(
        x_nhwc, w_hwio, window_strides=(1, 1), padding="SAME",
        dimension_numbers=("NHWC", "HWIO", "NHWC"))
    y = jnp.maximum(y + b.reshape(1, 1, 1, -1), 0.0)
    return jnp.mean(y, axis=(1, 2))                                     # (N, F)


if __name__ == "__main__":
    # Small shapes consistent with the module's forward (NCHW conv input).
    N, Cin, H, W = 2, 4, 16, 16
    F, K = 8, 3

    key = jax.random.PRNGKey(0)
    k_x, k_w, k_b = jax.random.split(key, 3)
    x = jax.random.normal(k_x, (N, Cin, H, W), dtype=jnp.float32)
    # Deterministic synthetic feature_module params (Conv2d weight in HWIO layout).
    w = jax.random.normal(k_w, (K, K, Cin, F), dtype=jnp.float32) * 0.1
    b = jax.random.normal(k_b, (F,), dtype=jnp.float32) * 0.1

    out = phase_classifier_forward(x, w, b)
    out = jax.block_until_ready(out)

    ref = _reference(x, w, b)
    assert out.shape == (N, F)
    assert jnp.allclose(out, ref, atol=1e-4, rtol=1e-4), (
        f"mismatch: max abs err {jnp.max(jnp.abs(out - ref))}")

    print("KERNEL_OK")
</pallas_src>

<mosaic_0001>
module attributes {stable_mosaic.version = 11 : i64} {
  func.func @_kernel(%arg0: i32, %arg1: i32, %arg2: memref<512x128xf32, #tpu.memory_space<vmem>>, %arg3: memref<128x128xf32, #tpu.memory_space<vmem>>, %arg4: memref<1x128xf32, #tpu.memory_space<vmem>>, %arg5: memref<8x512xf32, #tpu.memory_space<vmem>>, %arg6: memref<8x128xf32, #tpu.memory_space<vmem>>) attributes {dimension_semantics = [#tpu.dimension_semantics<parallel>, #tpu.dimension_semantics<arbitrary>], iteration_bounds = array<i64: 1, 1>, scalar_prefetch = 0 : i64, scratch_operands = 0 : i64, tpu.core_type = #tpu.core_type<tc>, window_params = [{transform_indices = @transform_0, window_bounds = array<i64: 512, 128>}, {pipeline_mode = #tpu.pipeline_mode<synchronous>, transform_indices = @transform_1, window_bounds = array<i64: 128, 128>}, {pipeline_mode = #tpu.pipeline_mode<synchronous>, transform_indices = @transform_2, window_bounds = array<i64: 1, 128>}, {transform_indices = @transform_3, window_bounds = array<i64: 8, 512>}, {transform_indices = @transform_4, window_bounds = array<i64: 8, 128>}]} {
    %c0 = arith.constant 0 : index
    %c0_0 = arith.constant 0 : index
    %0 = vector.load %arg2[%c0, %c0_0] : memref<512x128xf32, #tpu.memory_space<vmem>>, vector<512x128xf32>
    %c0_1 = arith.constant 0 : index
    %c0_2 = arith.constant 0 : index
    %1 = vector.load %arg3[%c0_1, %c0_2] : memref<128x128xf32, #tpu.memory_space<vmem>>, vector<128x128xf32>
    %cst = arith.constant dense<0.000000e+00> : vector<512x128xf32>
    %2 = tpu.matmul %0, %1, %cst {dimension_numbers = #tpu.dot_dimension_numbers<[1], [0], [0], [1], [0, 0, 1, 1], [], []>} : vector<512x128xf32>, vector<128x128xf32>, vector<512x128xf32> -> vector<512x128xf32>
    %c0_3 = arith.constant 0 : index
    %c0_4 = arith.constant 0 : index
    %3 = vector.load %arg4[%c0_3, %c0_4] : memref<1x128xf32, #tpu.memory_space<vmem>>, vector<1x128xf32>
    %4 = vector.broadcast %3 : vector<1x128xf32> to vector<512x128xf32>
    %5 = arith.addf %2, %4 : vector<512x128xf32>
    %cst_5 = arith.constant 0.000000e+00 : f32
    %6 = vector.broadcast %cst_5 : f32 to vector<512x128xf32>
    %7 = arith.maximumf %5, %6 : vector<512x128xf32>
    %c0_6 = arith.constant 0 : index
    %c0_7 = arith.constant 0 : index
    %8 = vector.load %arg5[%c0_6, %c0_7] : memref<8x512xf32, #tpu.memory_space<vmem>>, vector<8x512xf32>
    %cst_8 = arith.constant dense<0.000000e+00> : vector<8x128xf32>
    %9 = tpu.matmul %8, %7, %cst_8 {dimension_numbers = #tpu.dot_dimension_numbers<[1], [0], [0], [1], [0, 0, 1, 1], [], []>} : vector<8x512xf32>, vector<512x128xf32>, vector<8x128xf32> -> vector<8x128xf32>
    %c0_i32 = arith.constant 0 : i32
    %10 = arith.cmpi eq, %arg1, %c0_i32 : i32
    %11 = arith.extui %10 : i1 to i32
    %c0_i32_9 = arith.constant 0 : i32
    %12 = arith.cmpi ne, %11, %c0_i32_9 : i32
    scf.if %12 {
      %c0_12 = arith.constant 0 : index
      %c0_13 = arith.constant 0 : index
      %16 = vector.load %arg6[%c0_12, %c0_13] : memref<8x128xf32, #tpu.memory_space<vmem>>, vector<8x128xf32>
      tpu.vector_store %arg6[%c0_12, %c0_13], %9 {strides = array<i32>} : memref<8x128xf32, #tpu.memory_space<vmem>>, vector<8x128xf32>,
    } else {
    }
    %c0_i32_10 = arith.constant 0 : i32
    %13 = arith.cmpi ne, %arg1, %c0_i32_10 : i32
    %14 = arith.extui %13 : i1 to i32
    %c0_i32_11 = arith.constant 0 : i32
    %15 = arith.cmpi ne, %14, %c0_i32_11 : i32
    scf.if %15 {
      %c0_12 = arith.constant 0 : index
      %c0_13 = arith.constant 0 : index
      %16 = vector.load %arg6[%c0_12, %c0_13] : memref<8x128xf32, #tpu.memory_space<vmem>>, vector<8x128xf32>
      %17 = arith.addf %16, %9 : vector<8x128xf32>
      %c0_14 = arith.constant 0 : index
      %c0_15 = arith.constant 0 : index
      %18 = vector.load %arg6[%c0_14, %c0_15] : memref<8x128xf32, #tpu.memory_space<vmem>>, vector<8x128xf32>
      tpu.vector_store %arg6[%c0_14, %c0_15], %17 {strides = array<i32>} : memref<8x128xf32, #tpu.memory_space<vmem>>, vector<8x128xf32>,
    } else {
    }
    return
  }
  func.func @transform_0(%arg0: i32, %arg1: i32) -> (i32, i32) {
    %c1_i32 = arith.constant 1 : i32
    %0 = arith.muli %arg0, %c1_i32 : i32
    %1 = arith.addi %0, %arg1 : i32
    %c0_i32 = arith.constant 0 : i32
    %c0_i32_0 = arith.constant 0 : i32
    return %1, %c0_i32 : i32, i32
  }
  func.func @transform_1(%arg0: i32, %arg1: i32) -> (i32, i32) {
    %c0_i32 = arith.constant 0 : i32
    %c0_i32_0 = arith.constant 0 : i32
    %c0_i32_1 = arith.constant 0 : i32
    return %c0_i32, %c0_i32_0 : i32, i32
  }
  func.func @transform_2(%arg0: i32, %arg1: i32) -> (i32, i32) {
    %c0_i32 = arith.constant 0 : i32
    %c0_i32_0 = arith.constant 0 : i32
    %c0_i32_1 = arith.constant 0 : i32
    return %c0_i32, %c0_i32_0 : i32, i32
  }
  func.func @transform_3(%arg0: i32, %arg1: i32) -> (i32, i32) {
    %c0_i32 = arith.constant 0 : i32
    return %arg0, %arg1 : i32, i32
  }
  func.func @transform_4(%arg0: i32, %arg1: i32) -> (i32, i32) {
    %c0_i32 = arith.constant 0 : i32
    %c0_i32_0 = arith.constant 0 : i32
    return %arg0, %c0_i32 : i32, i32
  }
}

</mosaic_0001>

<bundles_post_ra>
// kernel: tpu_custom_call.1
= control target key start
LH: loop header
LB: loop body
LE: loop exit
PB: predicated region body
PF: predicated region fallthrough
CT: control target
= control target key end

     0   :  { %9 = vsyncpa [#allocation3], 0  ;;  %s1474_s0 = inlined_call_operand.hbm [shape: f32[512,128], index: 0, kind: input, shape index: {}]   ;;  %s1475_s1 = inlined_call_operand.hbm [shape: f32[128,128], index: 1, kind: input, shape index: {}]   ;;  %s1476_s2 = inlined_call_operand.vmem [shape: f32[1,128], index: 2, kind: input, shape index: {}]   ;;  %s1477_s3 = inlined_call_operand.hbm [shape: f32[8,512], index: 3, kind: input, shape index: {}]   ;;  %s1478_s4 = inlined_call_operand.hbm [shape: f32[8,128], index: 4, kind: output, shape index: {}]  }
   0x1   :  { %10 = vsyncpa [#allocation6], 0 }
   0x2   :  { %11 = vsyncpa [#allocation4], 0  ;;  %s1262_s15 = smov [#allocation5]   ;;  %s1263_s17 = smov [#allocation2]  }
   0x3   :  { %s33_s16 = sshll.u32 %s1262_s15, 4  ;;  %s21_s18 = sshll.u32 %s1263_s17, 4  ;;  %s34_s16 = int_to_ptr.vmem [resolvable:$true] %s33_s16  ;;  %s1293_s18 = int_to_ptr.vmem [resolvable:$true] %s21_s18 }
   0x4   :  { %s1168_s21 = scalar_lea.hbm %s1475_s1, 2048 }
   0x5   :  { %p1169_p0 = scmp.ne.s32.totalorder %s1475_s1, %s1168_s21  ;;  %p1172_p1 = scmp.lt.u32.totalorder %s1168_s21, %s1475_s1 }
   0x7   :  { %p1174_p2 = pnand %p1172_p1, %p1169_p0 }
   0x9   :  { %1177 = shalt.err (!%p1174_p2)
}
   0xa   :  { %s1178_s26 = scalar_lea.vmem %s34_s16, 2048  ;;  %p1183_p4 = scmp.lt.s32.totalorder %s34_s16, %s34_s16 }
   0xb   :  { %p1179_p3 = scmp.ne.s32.totalorder %s34_s16, %s1178_s26  ;;  %p1184_p5 = scmp.lt.s32.totalorder %s1178_s26, %s1178_s26 }
   0xd   :  { %p1185_p6 = por %p1184_p5, %p1183_p4 }
   0xf   :  { %p1186_p7 = pnand %p1185_p6, %p1179_p3 }
  0x11   :  { %1189 = shalt.err (!%p1186_p7)
}
  0x12   :  { %s1264_s27 = smov 128   ;;  %s1265_s28 = smov 8  }
  0x13   :  { %39 = dma.hbm_to_vmem [thread:$0]  %s1475_s1, 2048, %s34_s16, [#allocation6], %s1264_s27, %s1264_s27, %s1265_s28  }
  0x14   :  { %s1190_s7 = scalar_lea.hbm %s1474_s0, 8192 }
  0x15   :  { %p1191_p8 = scmp.ne.s32.totalorder %s1474_s0, %s1190_s7  ;;  %p1194_p9 = scmp.lt.u32.totalorder %s1190_s7, %s1474_s0 }
  0x17   :  { %p1196_p10 = pnand %p1194_p9, %p1191_p8 }
  0x19   :  { %1199 = shalt.err (!%p1196_p10)
}
  0x1a   :  { %s1200_s12 = scalar_lea.vmem %s1293_s18, 8192  ;;  %p1205_p12 = scmp.lt.s32.totalorder %s1293_s18, %s1293_s18 }
  0x1b   :  { %p1201_p11 = scmp.ne.s32.totalorder %s1293_s18, %s1200_s12  ;;  %p1206_p13 = scmp.lt.s32.totalorder %s1200_s12, %s1200_s12 }
  0x1d   :  { %p1207_p0 = por %p1206_p13, %p1205_p12 }
  0x1f   :  { %p1208_p1 = pnand %p1207_p0, %p1201_p11 }
  0x21   :  { %1211 = shalt.err (!%p1208_p1)
}
  0x22   :  { %27 = dma.hbm_to_vmem [thread:$0]  %s1474_s0, 8192, %s1293_s18, [#allocation3], %s1264_s27, %s1264_s27, %s1265_s28  }
  0x23   :  { %s1266_s14 = smov [#allocation7]   ;;  %s1212_s19 = scalar_lea.hbm %s1477_s3, 512 }
  0x24   :  { %s48_s15 = sshll.u32 %s1266_s14, 4  ;;  %p1213_p2 = scmp.ne.s32.totalorder %s1477_s3, %s1212_s19  ;;  %s49_s15 = int_to_ptr.vmem [resolvable:$true] %s48_s15 }
  0x25   :  { %p1216_p3 = scmp.lt.u32.totalorder %s1212_s19, %s1477_s3 }
  0x27   :  { %p1218_p4 = pnand %p1216_p3, %p1213_p2 }
  0x29   :  { %1221 = shalt.err (!%p1218_p4)
}
  0x2a   :  { %s1222_s24 = scalar_lea.vmem %s49_s15, 512  ;;  %p1227_p6 = scmp.lt.s32.totalorder %s49_s15, %s49_s15 }
  0x2b   :  { %p1223_p5 = scmp.ne.s32.totalorder %s49_s15, %s1222_s24  ;;  %p1228_p7 = scmp.lt.s32.totalorder %s1222_s24, %s1222_s24 }
  0x2d   :  { %p1229_p8 = por %p1228_p7, %p1227_p6 }
  0x2f   :  { %p1230_p9 = pnand %p1229_p8, %p1223_p5 }
  0x31   :  { %1233 = shalt.err (!%p1230_p9)
}
  0x32   :  { %51 = dma.hbm_to_vmem [thread:$0]  %s1477_s3, 512, %s49_s15, [#allocation6]  }
  0x33   :  { %1256 = dma.done.wait [#allocation3], 8192  }
  0x34   :  { %1257 = vsyncadd [#allocation3], 4294959104 }
  0x35   :  { %1258 = dma.done.wait [#allocation6], 2560  }
  0x36   :  { %1259 = vsyncadd [#allocation6], 4294964736  ;;  %v127_v0 = vld [vmem:[#allocation5] sm:$0xff]  ;;  %v128_v1 = vld [vmem:[#allocation5 + $0x8] sm:$0xff] }
  0x37   :  { %v129_v2 = vld [vmem:[#allocation5 + $0x10] sm:$0xff]  ;;  %v1050_v3 = vpack.c.bf16 %v128_v1, %v127_v0  ;;  %v130_v4 = vld [vmem:[#allocation5 + $0x18] sm:$0xff]  ;;  %v131_v6 = vld [vmem:[#allocation5 + $0x20] sm:$0xff] }
  0x38   :  { %v1054_v5 = vpack.c.bf16 %v130_v4, %v129_v2  ;;  %v132_v7 = vld [vmem:[#allocation5 + $0x28] sm:$0xff]  ;;  %v63_v9 = vld [vmem:[#allocation2] sm:$0xff]  ;;  %v133_v10 = vld [vmem:[#allocation5 + $0x30] sm:$0xff] }
  0x39   :  { %1051 = vmatprep.subr.bf16.mxu0 %v1050_v3  ;;  %1146 = vmatprep.subr.bf16.mxu1 %v1050_v3  ;;  %v1058_v8 = vpack.c.bf16 %v132_v7, %v131_v6  ;;  %v134_v11 = vld [vmem:[#allocation5 + $0x38] sm:$0xff]  ;;  %v135_v13 = vld [vmem:[#allocation5 + $0x40] sm:$0xff]  ;;  %v136_v14 = vld [vmem:[#allocation5 + $0x48] sm:$0xff] }
  0x3a   :  { %1053 = vmatpush3.bf16.msra.mxu0 %v1050_v3  ;;  %1154 = vmatpush3.bf16.msra.mxu1 %v1050_v3  ;;  %v1062_v12 = vpack.c.bf16 %v134_v11, %v133_v10  ;;  %v1066_v15 = vpack.c.bf16 %v136_v14, %v135_v13  ;;  %v137_v16 = vld [vmem:[#allocation5 + $0x50] sm:$0xff]  ;;  %v138_v17 = vld [vmem:[#allocation5 + $0x58] sm:$0xff]  ;;  %v139_v20 = vld [vmem:[#allocation5 + $0x60] sm:$0xff] }
  0x3b   :  { %1055 = vmatprep.subr.bf16.mxu0 %v1054_v5  ;;  %1147 = vmatprep.subr.bf16.mxu1 %v1054_v5  ;;  %v105_v18 = vld [vmem:[#allocation2 + $0x150] sm:$0xff]  ;;  %v1070_v19 = vpack.c.bf16 %v138_v17, %v137_v16  ;;  %v140_v21 = vld [vmem:[#allocation5 + $0x68] sm:$0xff]  ;;  %v142_v24 = vld [vmem:[#allocation5 + $0x78] sm:$0xff] }
  0x3c   :  { %954 = vmatprep.mubr.f32.mxu0 %v63_v9  ;;  %1017 = vmatprep.mubr.f32.mxu1 %v105_v18  ;;  %v1074_v22 = vpack.c.bf16 %v140_v21, %v139_v20  ;;  %v141_v23 = vld [vmem:[#allocation5 + $0x70] sm:$0xff]  ;;  %v64_v26 = vld [vmem:[#allocation2 + $0x8] sm:$0xff]  ;;  %v106_v27 = vld [vmem:[#allocation2 + $0x158] sm:$0xff] }
  0x3d   :  { %v1078_v25 = vpack.c.bf16 %v142_v24, %v141_v23  ;;  %v65_v28 = vld [vmem:[#allocation2 + $0x10] sm:$0xff]  ;;  %v107_v29 = vld [vmem:[#allocation2 + $0x160] sm:$0xff]  ;;  %v66_v30 = vld [vmem:[#allocation2 + $0x18] sm:$0xff] }
  0x3e   :  { %1057 = vmatpush3.bf16.msra.mxu0 %v1054_v5  ;;  %1155 = vmatpush3.bf16.msra.mxu1 %v1054_v5  ;;  %v108_v31 = vld [vmem:[#allocation2 + $0x168] sm:$0xff]  ;;  %v67_v32 = vld [vmem:[#allocation2 + $0x20] sm:$0xff]  ;;  %v109_v33 = vld [vmem:[#allocation2 + $0x170] sm:$0xff] }
  0x3f   :  { %1059 = vmatprep.subr.bf16.mxu0 %v1058_v8  ;;  %1148 = vmatprep.subr.bf16.mxu1 %v1058_v8  ;;  %v68_v34 = vld [vmem:[#allocation2 + $0x28] sm:$0xff]  ;;  %v110_v35 = vld [vmem:[#allocation2 + $0x178] sm:$0xff]  ;;  %v69_v36 = vld [vmem:[#allocation2 + $0x30] sm:$0xff] }
  0x40   :  { %v111_v37 = vld [vmem:[#allocation2 + $0x180] sm:$0xff]  ;;  %v70_v38 = vld [vmem:[#allocation2 + $0x38] sm:$0xff]  ;;  %v112_v39 = vld [vmem:[#allocation2 + $0x188] sm:$0xff] }
  0x41   :  { %v71_v40 = vld [vmem:[#allocation2 + $0x40] sm:$0xff]  ;;  %v113_v41 = vld [vmem:[#allocation2 + $0x190] sm:$0xff]  ;;  %v72_v42 = vld [vmem:[#allocation2 + $0x48] sm:$0xff] }
  0x42   :  { %1061 = vmatpush3.bf16.msra.mxu0 %v1058_v8  ;;  %1156 = vmatpush3.bf16.msra.mxu1 %v1058_v8  ;;  %v114_v43 = vld [vmem:[#allocation2 + $0x198] sm:$0xff]  ;;  %v73_v44 = vld [vmem:[#allocation2 + $0x50] sm:$0xff]  ;;  %v115_v45 = vld [vmem:[#allocation2 + $0x1a0] sm:$0xff] }
  0x43   :  { %1063 = vmatprep.subr.bf16.mxu0 %v1062_v12  ;;  %1149 = vmatprep.subr.bf16.mxu1 %v1062_v12  ;;  %v74_v46 = vld [vmem:[#allocation2 + $0x58] sm:$0xff]  ;;  %v116_v47 = vld [vmem:[#allocation2 + $0x1a8] sm:$0xff]  ;;  %v75_v48 = vld [vmem:[#allocation2 + $0x60] sm:$0xff] }
  0x44   :  { %v117_v49 = vld [vmem:[#allocation2 + $0x1b0] sm:$0xff]  ;;  %v76_v50 = vld [vmem:[#allocation2 + $0x68] sm:$0xff]  ;;  %v118_v51 = vld [vmem:[#allocation2 + $0x1b8] sm:$0xff] }
  0x45   :  { %v77_v52 = vld [vmem:[#allocation2 + $0x70] sm:$0xff]  ;;  %v119_v53 = vld [vmem:[#allocation2 + $0x1c0] sm:$0xff]  ;;  %v78_v54 = vld [vmem:[#allocation2 + $0x78] sm:$0xff] }
  0x46   :  { %1065 = vmatpush3.bf16.msra.mxu0 %v1062_v12  ;;  %1157 = vmatpush3.bf16.msra.mxu1 %v1062_v12  ;;  %v120_v55 = vld [vmem:[#allocation2 + $0x1c8] sm:$0xff]  ;;  %v79_v56 = vld [vmem:[#allocation2 + $0x80] sm:$0xff]  ;;  %v121_v57 = vld [vmem:[#allocation2 + $0x1d0] sm:$0xff] }
  0x47   :  { %1067 = vmatprep.subr.bf16.mxu0 %v1066_v15  ;;  %1150 = vmatprep.subr.bf16.mxu1 %v1066_v15  ;;  %v80_v58 = vld [vmem:[#allocation2 + $0x88] sm:$0xff]  ;;  %v122_v59 = vld [vmem:[#allocation2 + $0x1d8] sm:$0xff]  ;;  %v81_v60 = vld [vmem:[#allocation2 + $0x90] sm:$0xff] }
  0x48   :  { %v123_v61 = vld [vmem:[#allocation2 + $0x1e0] sm:$0xff]  ;;  %v82_v62 = vld [vmem:[#allocation2 + $0x98] sm:$0xff]  ;;  %v124_v63 = vld [vmem:[#allocation2 + $0x1e8] sm:$0xff] }
  0x49   :  { %v83_v0 = vld [vmem:[#allocation2 + $0xa0] sm:$0xff]  ;;  %v125_v1 = vld [vmem:[#allocation2 + $0x1f0] sm:$0xff]  ;;  %v84_v2 = vld [vmem:[#allocation2 + $0xa8] sm:$0xff] }
  0x4a   :  { %1069 = vmatpush3.bf16.msra.mxu0 %v1066_v15  ;;  %1158 = vmatpush3.bf16.msra.mxu1 %v1066_v15  ;;  %v126_v3 = vld [vmem:[#allocation2 + $0x1f8] sm:$0xff]  ;;  %v85_v4 = vld [vmem:[#allocation2 + $0xb0] sm:$0xff]  ;;  %v87_v6 = vld [vmem:[#allocation2 + $0xc0] sm:$0xff] }
  0x4b   :  { %1071 = vmatprep.subr.bf16.mxu0 %v1070_v19  ;;  %1151 = vmatprep.subr.bf16.mxu1 %v1070_v19  ;;  %v86_v5 = vld [vmem:[#allocation2 + $0xb8] sm:$0xff]  ;;  %v88_v7 = vld [vmem:[#allocation2 + $0xc8] sm:$0xff]  ;;  %v89_v8 = vld [vmem:[#allocation2 + $0xd0] sm:$0xff] }
  0x4c   :  { %v90_v9 = vld [vmem:[#allocation2 + $0xd8] sm:$0xff]  ;;  %v91_v10 = vld [vmem:[#allocation2 + $0xe0] sm:$0xff]  ;;  %v92_v11 = vld [vmem:[#allocation2 + $0xe8] sm:$0xff] }
  0x4d   :  { %v93_v12 = vld [vmem:[#allocation2 + $0xf0] sm:$0xff]  ;;  %v94_v13 = vld [vmem:[#allocation2 + $0xf8] sm:$0xff]  ;;  %v95_v14 = vld [vmem:[#allocation2 + $0x100] sm:$0xff] }
  0x4e   :  { %1073 = vmatpush3.bf16.msra.mxu0 %v1070_v19  ;;  %1159 = vmatpush3.bf16.msra.mxu1 %v1070_v19  ;;  %v96_v15 = vld [vmem:[#allocation2 + $0x108] sm:$0xff]  ;;  %v97_v16 = vld [vmem:[#allocation2 + $0x110] sm:$0xff]  ;;  %v98_v17 = vld [vmem:[#allocation2 + $0x118] sm:$0xff] }
  0x4f   :  { %1075 = vmatprep.subr.bf16.mxu0 %v1074_v22  ;;  %1152 = vmatprep.subr.bf16.mxu1 %v1074_v22  ;;  %v99_v18 = vld [vmem:[#allocation2 + $0x120] sm:$0xff]  ;;  %v100_v19 = vld [vmem:[#allocation2 + $0x128] sm:$0xff]  ;;  %v101_v20 = vld [vmem:[#allocation2 + $0x130] sm:$0xff] }
  0x50   :  { %v102_v21 = vld [vmem:[#allocation2 + $0x138] sm:$0xff]  ;;  %v104_v23 = vld [vmem:[#allocation2 + $0x148] sm:$0xff] }
  0x51   :  { %v600_v24 = vld [vmem:[#allocation7 + $0x8] sm:$0xff] }
  0x52   :  { %1077 = vmatpush3.bf16.msra.mxu0 %v1074_v22  ;;  %1160 = vmatpush3.bf16.msra.mxu1 %v1074_v22  ;;  %v103_v22 = vld [vmem:[#allocation2 + $0x140] sm:$0xff] }
  0x53   :  { %1079 = vmatprep.subr.bf16.mxu0 %v1078_v25  ;;  %1153 = vmatprep.subr.bf16.mxu1 %v1078_v25 }
  0x56   :  { %1081 = vmatpush3.bf16.msra.mxu0 %v1078_v25  ;;  %1161 = vmatpush3.bf16.msra.mxu1 %v1078_v25  ;;  %v1339_v25 = vld [vmem:[%s1476_s2] ss:$0 sm:$0xff]  ;;  %s1267_s2 = smov [#allocation8]  }
  0x57   :  { %s761_s26 = sshll.u32 %s1267_s2, 4  ;;  %s762_s26 = int_to_ptr.vmem [resolvable:$true] %s761_s26 }
  0x58   :  { %s1234_s27 = scalar_lea.vmem %s762_s26, 128  ;;  %p1239_p11 = scmp.lt.s32.totalorder %s762_s26, %s762_s26 }
  0x59   :  { %955 = vmatmul.mubr.f32.vlgmr.msra.gmra.mrb[0].mxu0 %v64_v26  ;;  %1018 = vmatmul.mubr.f32.vlgmr.msra.gmra.mrb[0].mxu1 %v106_v27  ;;  %p1235_p10 = scmp.ne.s32.totalorder %s762_s26, %s1234_s27  ;;  %p1240_p12 = scmp.lt.s32.totalorder %s1234_s27, %s1234_s27 }
  0x5a   :  { %957 = vmatprep.mubr.f32.mxu0 %v65_v28  ;;  %1020 = vmatprep.mubr.f32.mxu1 %v107_v29 }
  0x5b   :  { %p1241_p13 = por %p1240_p12, %p1239_p11 }
  0x5d   :  { %958 = vmatmul.mubr.f32.gmra.mrb[2].mxu0 %v66_v30  ;;  %1021 = vmatmul.mubr.f32.gmra.mrb[2].mxu1 %v108_v31  ;;  %p1242_p0 = pnand %p1241_p13, %p1235_p10 }
  0x5e   :  { %960 = vmatprep.mubr.f32.mxu0 %v67_v32  ;;  %1023 = vmatprep.mubr.f32.mxu1 %v109_v33 }
  0x61   :  { %961 = vmatmul.mubr.f32.gmra.mrb[4].mxu0 %v68_v34  ;;  %1024 = vmatmul.mubr.f32.gmra.mrb[4].mxu1 %v110_v35 }
  0x62   :  { %963 = vmatprep.mubr.f32.mxu0 %v69_v36  ;;  %1026 = vmatprep.mubr.f32.mxu1 %v111_v37 }
  0x65   :  { %964 = vmatmul.mubr.f32.gmra.mrb[6].mxu0 %v70_v38  ;;  %1027 = vmatmul.mubr.f32.gmra.mrb[6].mxu1 %v112_v39 }
  0x66   :  { %966 = vmatprep.mubr.f32.mxu0 %v71_v40  ;;  %1029 = vmatprep.mubr.f32.mxu1 %v113_v41 }
  0x69   :  { %967 = vmatmul.mubr.f32.gmra.mrb[8].mxu0 %v72_v42  ;;  %1030 = vmatmul.mubr.f32.gmra.mrb[8].mxu1 %v114_v43 }
  0x6a   :  { %969 = vmatprep.mubr.f32.mxu0 %v73_v44  ;;  %1032 = vmatprep.mubr.f32.mxu1 %v115_v45 }
  0x6d   :  { %970 = vmatmul.mubr.f32.gmra.mrb[10].mxu0 %v74_v46  ;;  %1033 = vmatmul.mubr.f32.gmra.mrb[10].mxu1 %v116_v47 }
  0x6e   :  { %972 = vmatprep.mubr.f32.mxu0 %v75_v48  ;;  %1035 = vmatprep.mubr.f32.mxu1 %v117_v49 }
  0x71   :  { %973 = vmatmul.mubr.f32.gmra.mrb[12].mxu0 %v76_v50  ;;  %1036 = vmatmul.mubr.f32.gmra.mrb[12].mxu1 %v118_v51 }
  0x72   :  { %975 = vmatprep.mubr.f32.mxu0 %v77_v52  ;;  %1038 = vmatprep.mubr.f32.mxu1 %v119_v53 }
  0x75   :  { %976 = vmatmul.mubr.f32.gmra.mrb[14].mxu0 %v78_v54  ;;  %1039 = vmatmul.mubr.f32.gmra.mrb[14].mxu1 %v120_v55 }
  0x76   :  { %978 = vmatprep.mubr.f32.mxu0 %v79_v56  ;;  %1041 = vmatprep.mubr.f32.mxu1 %v121_v57 }
  0x79   :  { %979 = vmatmul.mubr.f32.gmra.mrb[16].mxu0 %v80_v58  ;;  %1042 = vmatmul.mubr.f32.gmra.mrb[16].mxu1 %v122_v59 }
  0x7a   :  { %981 = vmatprep.mubr.f32.mxu0 %v81_v60  ;;  %1044 = vmatprep.mubr.f32.mxu1 %v123_v61 }
  0x7d   :  { %982 = vmatmul.mubr.f32.gmra.mrb[18].mxu0 %v82_v62  ;;  %1045 = vmatmul.mubr.f32.gmra.mrb[18].mxu1 %v124_v63 }
  0x7e   :  { %984 = vmatprep.mubr.f32.mxu0 %v83_v0  ;;  %1047 = vmatprep.mubr.f32.mxu1 %v125_v1 }
  0x81   :  { %985 = vmatmul.mubr.f32.gmra.mrb[20].mxu0 %v84_v2  ;;  %1048 = vmatmul.mubr.f32.gmra.mrb[20].mxu1 %v126_v3 }
  0x82   :  { %987 = vmatprep.mubr.f32.mxu0 %v85_v4  ;;  %667 = vmatprep.mubr.f32.mxu1 %v600_v24 }
  0x85   :  { %988 = vmatmul.mubr.f32.gmra.mrb[22].mxu0 %v86_v5 }
  0x86   :  { %990 = vmatprep.mubr.f32.mxu0 %v87_v6 }
  0x89   :  { %991 = vmatmul.mubr.f32.gmra.mrb[24].mxu0 %v88_v7 }
  0x8a   :  { %993 = vmatprep.mubr.f32.mxu0 %v89_v8 }
  0x8d   :  { %994 = vmatmul.mubr.f32.gmra.mrb[26].mxu0 %v90_v9 }
  0x8e   :  { %996 = vmatprep.mubr.f32.mxu0 %v91_v10 }
  0x91   :  { %997 = vmatmul.mubr.f32.gmra.mrb[28].mxu0 %v92_v11 }
  0x92   :  { %999 = vmatprep.mubr.f32.mxu0 %v93_v12 }
  0x95   :  { %1000 = vmatmul.mubr.f32.gmra.mrb[30].mxu0 %v94_v13 }
  0x96   :  { %1002 = vmatprep.mubr.f32.mxu0 %v95_v14 }
  0x99   :  { %1003 = vmatmul.mubr.f32.gmra.mrb[32].mxu0 %v96_v15 }
  0x9a   :  { %1005 = vmatprep.mubr.f32.mxu0 %v97_v16 }
  0x9d   :  { %1006 = vmatmul.mubr.f32.gmra.mrb[34].mxu0 %v98_v17 }
  0x9e   :  { %1008 = vmatprep.mubr.f32.mxu0 %v99_v18 }
  0xa1   :  { %1009 = vmatmul.mubr.f32.gmra.mrb[36].mxu0 %v100_v19 }
  0xa2   :  { %1011 = vmatprep.mubr.f32.mxu0 %v101_v20 }
  0xa5   :  { %1012 = vmatmul.mubr.f32.gmra.mrb[38].mxu0 %v102_v21 }
  0xa6   :  { %1014 = vmatprep.mubr.f32.mxu0 %v103_v22 }
  0xa9   :  { %1015 = vmatmul.mubr.f32.gmra.mrb[40].mxu0 %v104_v23 }
 0x12c   :  { %v956_v26 = vpop.f32.mrb[0].mxu0  ;;  %v1019_v27 = vpop.f32.mrb[0].mxu1 }
 0x12d   :  { %v222_v28 = vadd.f32 %v956_v26, %v1339_v25  ;;  %v216_v29 = vpop.f32.mrb[1].mxu0  ;;  %v432_v30 = vadd.f32 %v1019_v27, %v1339_v25  ;;  %v426_v31 = vpop.f32.mrb[1].mxu1 }
 0x12e   :  { %v217_v32 = vadd.f32 %v1339_v25, %v216_v29  ;;  %v427_v33 = vadd.f32 %v1339_v25, %v426_v31 }
 0x12f   :  { %v536_v34 = vmax.f32 %v222_v28, 0.0  ;;  %v578_v35 = vmax.f32 %v432_v30, 0.0 }
 0x130   :  { %v535_v36 = vmax.f32 %v217_v32, 0.0  ;;  %v959_v37 = vpop.f32.mrb[2].mxu0  ;;  %v577_v38 = vmax.f32 %v427_v33, 0.0  ;;  %v1022_v39 = vpop.f32.mrb[2].mxu1 }
 0x131   :  { %v232_v40 = vadd.f32 %v959_v37, %v1339_v25  ;;  %v226_v41 = vpop.f32.mrb[3].mxu0  ;;  %v442_v42 = vadd.f32 %v1022_v39, %v1339_v25  ;;  %v436_v43 = vpop.f32.mrb[3].mxu1 }
 0x132   :  { %v1347_v44 = vpack.c.bf16 %v536_v34, %v535_v36  ;;  %v227_v45 = vadd.f32 %v1339_v25, %v226_v41  ;;  %v1350_v46 = vpack.c.bf16 %v578_v35, %v577_v38  ;;  %v437_v47 = vadd.f32 %v1339_v25, %v436_v43 }
 0x133   :  { %v538_v48 = vmax.f32 %v232_v40, 0.0  ;;  %v580_v49 = vmax.f32 %v442_v42, 0.0 }
 0x134   :  { %v537_v50 = vmax.f32 %v227_v45, 0.0  ;;  %v962_v51 = vpop.f32.mrb[4].mxu0  ;;  %v579_v52 = vmax.f32 %v437_v47, 0.0  ;;  %v1025_v53 = vpop.f32.mrb[4].mxu1 }
 0x135   :  { %v242_v54 = vadd.f32 %v962_v51, %v1339_v25  ;;  %v236_v55 = vpop.f32.mrb[5].mxu0  ;;  %v452_v56 = vadd.f32 %v1025_v53, %v1339_v25  ;;  %v446_v57 = vpop.f32.mrb[5].mxu1 }
 0x136   :  { %v1355_v58 = vpack.c.bf16 %v538_v48, %v537_v50  ;;  %v237_v59 = vadd.f32 %v1339_v25, %v236_v55  ;;  %v1358_v60 = vpack.c.bf16 %v580_v49, %v579_v52  ;;  %v447_v61 = vadd.f32 %v1339_v25, %v446_v57 }
 0x137   :  { %v540_v62 = vmax.f32 %v242_v54, 0.0  ;;  %v582_v63 = vmax.f32 %v452_v56, 0.0 }
 0x138   :  { %v539_v0 = vmax.f32 %v237_v59, 0.0  ;;  %v965_v1 = vpop.f32.mrb[6].mxu0  ;;  %v581_v2 = vmax.f32 %v447_v61, 0.0  ;;  %v1028_v3 = vpop.f32.mrb[6].mxu1 }
 0x139   :  { %v252_v4 = vadd.f32 %v965_v1, %v1339_v25  ;;  %v246_v5 = vpop.f32.mrb[7].mxu0  ;;  %v462_v6 = vadd.f32 %v1028_v3, %v1339_v25  ;;  %v456_v7 = vpop.f32.mrb[7].mxu1 }
 0x13a   :  { %v1363_v8 = vpack.c.bf16 %v540_v62, %v539_v0  ;;  %v247_v9 = vadd.f32 %v1339_v25, %v246_v5  ;;  %v1366_v10 = vpack.c.bf16 %v582_v63, %v581_v2  ;;  %v457_v11 = vadd.f32 %v1339_v25, %v456_v7 }
 0x13b   :  { %v542_v12 = vmax.f32 %v252_v4, 0.0  ;;  %v584_v13 = vmax.f32 %v462_v6, 0.0 }
 0x13c   :  { %v541_v14 = vmax.f32 %v247_v9, 0.0  ;;  %v968_v15 = vpop.f32.mrb[8].mxu0  ;;  %v583_v16 = vmax.f32 %v457_v11, 0.0  ;;  %v1031_v17 = vpop.f32.mrb[8].mxu1 }
 0x13d   :  { %v262_v18 = vadd.f32 %v968_v15, %v1339_v25  ;;  %v256_v19 = vpop.f32.mrb[9].mxu0  ;;  %v472_v20 = vadd.f32 %v1031_v17, %v1339_v25  ;;  %v466_v21 = vpop.f32.mrb[9].mxu1 }
 0x13e   :  { %v1371_v22 = vpack.c.bf16 %v542_v12, %v541_v14  ;;  %v257_v23 = vadd.f32 %v1339_v25, %v256_v19  ;;  %v1374_v24 = vpack.c.bf16 %v584_v13, %v583_v16  ;;  %v467_v26 = vadd.f32 %v1339_v25, %v466_v21 }
 0x13f   :  { %v544_v27 = vmax.f32 %v262_v18, 0.0  ;;  %v586_v28 = vmax.f32 %v472_v20, 0.0 }
 0x140   :  { %v543_v29 = vmax.f32 %v257_v23, 0.0  ;;  %v971_v30 = vpop.f32.mrb[10].mxu0  ;;  %v585_v31 = vmax.f32 %v467_v26, 0.0  ;;  %v1034_v32 = vpop.f32.mrb[10].mxu1 }
 0x141   :  { %v272_v33 = vadd.f32 %v971_v30, %v1339_v25  ;;  %v266_v34 = vpop.f32.mrb[11].mxu0  ;;  %v482_v35 = vadd.f32 %v1034_v32, %v1339_v25  ;;  %v476_v36 = vpop.f32.mrb[11].mxu1 }
 0x142   :  { %v1379_v37 = vpack.c.bf16 %v544_v27, %v543_v29  ;;  %v267_v38 = vadd.f32 %v1339_v25, %v266_v34  ;;  %v1382_v39 = vpack.c.bf16 %v586_v28, %v585_v31  ;;  %v477_v40 = vadd.f32 %v1339_v25, %v476_v36 }
 0x143   :  { %v546_v41 = vmax.f32 %v272_v33, 0.0  ;;  %v588_v42 = vmax.f32 %v482_v35, 0.0 }
 0x144   :  { %v545_v43 = vmax.f32 %v267_v38, 0.0  ;;  %v974_v45 = vpop.f32.mrb[12].mxu0  ;;  %v587_v47 = vmax.f32 %v477_v40, 0.0  ;;  %v1037_v48 = vpop.f32.mrb[12].mxu1 }
 0x145   :  { %v282_v49 = vadd.f32 %v974_v45, %v1339_v25  ;;  %v276_v50 = vpop.f32.mrb[13].mxu0  ;;  %v492_v51 = vadd.f32 %v1037_v48, %v1339_v25  ;;  %v486_v52 = vpop.f32.mrb[13].mxu1 }
 0x146   :  { %v1387_v53 = vpack.c.bf16 %v546_v41, %v545_v43  ;;  %v277_v54 = vadd.f32 %v1339_v25, %v276_v50  ;;  %v1390_v55 = vpack.c.bf16 %v588_v42, %v587_v47  ;;  %v487_v56 = vadd.f32 %v1339_v25, %v486_v52 }
 0x147   :  { %v548_v57 = vmax.f32 %v282_v49, 0.0  ;;  %v590_v59 = vmax.f32 %v492_v51, 0.0 }
 0x148   :  { %v547_v61 = vmax.f32 %v277_v54, 0.0  ;;  %v977_v62 = vpop.f32.mrb[14].mxu0  ;;  %v589_v63 = vmax.f32 %v487_v56, 0.0  ;;  %v1040_v0 = vpop.f32.mrb[14].mxu1 }
 0x149   :  { %v292_v1 = vadd.f32 %v977_v62, %v1339_v25  ;;  %v286_v2 = vpop.f32.mrb[15].mxu0  ;;  %v502_v3 = vadd.f32 %v1040_v0, %v1339_v25  ;;  %v496_v4 = vpop.f32.mrb[15].mxu1 }
 0x14a   :  { %v1395_v5 = vpack.c.bf16 %v548_v57, %v547_v61  ;;  %v287_v6 = vadd.f32 %v1339_v25, %v286_v2  ;;  %v1398_v7 = vpack.c.bf16 %v590_v59, %v589_v63  ;;  %v497_v9 = vadd.f32 %v1339_v25, %v496_v4 }
 0x14b   :  { %v550_v11 = vmax.f32 %v292_v1, 0.0  ;;  %v592_v12 = vmax.f32 %v502_v3, 0.0 }
 0x14c   :  { %v549_v13 = vmax.f32 %v287_v6, 0.0  ;;  %v980_v14 = vpop.f32.mrb[16].mxu0  ;;  %v591_v15 = vmax.f32 %v497_v9, 0.0  ;;  %v1043_v16 = vpop.f32.mrb[16].mxu1 }
 0x14d   :  { %v302_v17 = vadd.f32 %v980_v14, %v1339_v25  ;;  %v296_v18 = vpop.f32.mrb[17].mxu0  ;;  %v512_v19 = vadd.f32 %v1043_v16, %v1339_v25  ;;  %v506_v20 = vpop.f32.mrb[17].mxu1 }
 0x14e   :  { %v1403_v21 = vpack.c.bf16 %v550_v11, %v549_v13  ;;  %v297_v23 = vadd.f32 %v1339_v25, %v296_v18  ;;  %v1406_v26 = vpack.c.bf16 %v592_v12, %v591_v15  ;;  %v507_v27 = vadd.f32 %v1339_v25, %v506_v20 }
 0x14f   :  { %v552_v28 = vmax.f32 %v302_v17, 0.0  ;;  %v594_v29 = vmax.f32 %v512_v19, 0.0 }
 0x150   :  { %v551_v30 = vmax.f32 %v297_v23, 0.0  ;;  %v983_v31 = vpop.f32.mrb[18].mxu0  ;;  %v593_v32 = vmax.f32 %v507_v27, 0.0  ;;  %v1046_v33 = vpop.f32.mrb[18].mxu1 }
 0x151   :  { %v312_v34 = vadd.f32 %v983_v31, %v1339_v25  ;;  %v306_v35 = vpop.f32.mrb[19].mxu0  ;;  %v522_v36 = vadd.f32 %v1046_v33, %v1339_v25  ;;  %v516_v38 = vpop.f32.mrb[19].mxu1 }
 0x152   :  { %v1082_v40 = vpack.c.bf16 %v552_v28, %v551_v30  ;;  %v307_v41 = vadd.f32 %v1339_v25, %v306_v35  ;;  %v1412_v42 = vpack.c.bf16 %v594_v29, %v593_v32  ;;  %v517_v43 = vadd.f32 %v1339_v25, %v516_v38 }
 0x153   :  { %v554_v45 = vmax.f32 %v312_v34, 0.0  ;;  %v596_v47 = vmax.f32 %v522_v36, 0.0 }
 0x154   :  { %v553_v48 = vmax.f32 %v307_v41, 0.0  ;;  %v986_v49 = vpop.f32.mrb[20].mxu0  ;;  %1083 = vmatprep.subr.bf16.mxu1 %v1082_v40  ;;  %v595_v50 = vmax.f32 %v517_v43, 0.0  ;;  %v1049_v51 = vpop.f32.mrb[20].mxu1 }
 0x155   :  { %v322_v52 = vadd.f32 %v986_v49, %v1339_v25  ;;  %v316_v54 = vpop.f32.mrb[21].mxu0  ;;  %1085 = vmatpush3.bf16.msra.mxu1 %v1347_v44  ;;  %v532_v56 = vadd.f32 %v1049_v51, %v1339_v25  ;;  %v526_v57 = vpop.f32.mrb[21].mxu1 }
 0x156   :  { %v1086_v59 = vpack.c.bf16 %v554_v45, %v553_v48  ;;  %v317_v61 = vadd.f32 %v1339_v25, %v316_v54  ;;  %v1419_v62 = vpack.c.bf16 %v596_v47, %v595_v50  ;;  %v527_v63 = vadd.f32 %v1339_v25, %v526_v57 }
 0x157   :  { %v556_v0 = vmax.f32 %v322_v52, 0.0  ;;  %v598_v1 = vmax.f32 %v532_v56, 0.0 }
 0x158   :  { %v555_v2 = vmax.f32 %v317_v61, 0.0  ;;  %v989_v3 = vpop.f32.mrb[22].mxu0  ;;  %1087 = vmatprep.subr.bf16.mxu1 %v1086_v59  ;;  %v597_v4 = vmax.f32 %v527_v63, 0.0  ;;  %v599_v63 = vld [vmem:[#allocation7] sm:$0xff] }
 0x159   :  { %v332_v6 = vadd.f32 %v989_v3, %v1339_v25  ;;  %v326_v9 = vpop.f32.mrb[23].mxu0  ;;  %1089 = vmatpush3.bf16.msra.mxu1 %v1355_v58 }
 0x15a   :  { %v1090_v44 = vpack.c.bf16 %v556_v0, %v555_v2  ;;  %v327_v11 = vadd.f32 %v1339_v25, %v326_v9  ;;  %v1425_v12 = vpack.c.bf16 %v598_v1, %v597_v4 }
 0x15b   :  { %v558_v13 = vmax.f32 %v332_v6, 0.0 }
 0x15c   :  { %v557_v14 = vmax.f32 %v327_v11, 0.0  ;;  %v992_v15 = vpop.f32.mrb[24].mxu0  ;;  %1091 = vmatprep.subr.bf16.mxu1 %v1090_v44 }
 0x15d   :  { %v342_v16 = vadd.f32 %v992_v15, %v1339_v25  ;;  %v336_v17 = vpop.f32.mrb[25].mxu0  ;;  %1093 = vmatpush3.bf16.msra.mxu1 %v1363_v8 }
 0x15e   :  { %v1094_v18 = vpack.c.bf16 %v558_v13, %v557_v14  ;;  %v337_v19 = vadd.f32 %v1339_v25, %v336_v17 }
 0x15f   :  { %v560_v20 = vmax.f32 %v342_v16, 0.0 }
 0x160   :  { %v559_v23 = vmax.f32 %v337_v19, 0.0  ;;  %v995_v58 = vpop.f32.mrb[26].mxu0  ;;  %1095 = vmatprep.subr.bf16.mxu1 %v1094_v18 }
 0x161   :  { %v352_v27 = vadd.f32 %v995_v58, %v1339_v25  ;;  %v346_v28 = vpop.f32.mrb[27].mxu0  ;;  %1097 = vmatpush3.bf16.msra.mxu1 %v1371_v22 }
 0x162   :  { %v1098_v29 = vpack.c.bf16 %v560_v20, %v559_v23  ;;  %v347_v30 = vadd.f32 %v1339_v25, %v346_v28 }
 0x163   :  { %v562_v31 = vmax.f32 %v352_v27, 0.0 }
 0x164   :  { %v561_v32 = vmax.f32 %v347_v30, 0.0  ;;  %v998_v33 = vpop.f32.mrb[28].mxu0  ;;  %1099 = vmatprep.subr.bf16.mxu1 %v1098_v29 }
 0x165   :  { %v362_v8 = vadd.f32 %v998_v33, %v1339_v25  ;;  %v356_v34 = vpop.f32.mrb[29].mxu0  ;;  %1101 = vmatpush3.bf16.msra.mxu1 %v1379_v37 }
 0x166   :  { %v1102_v35 = vpack.c.bf16 %v562_v31, %v561_v32  ;;  %v357_v36 = vadd.f32 %v1339_v25, %v356_v34 }
 0x167   :  { %v564_v38 = vmax.f32 %v362_v8, 0.0 }
 0x168   :  { %v563_v40 = vmax.f32 %v357_v36, 0.0  ;;  %v1001_v41 = vpop.f32.mrb[30].mxu0  ;;  %1103 = vmatprep.subr.bf16.mxu1 %v1102_v35 }
 0x169   :  { %v372_v22 = vadd.f32 %v1001_v41, %v1339_v25  ;;  %v366_v43 = vpop.f32.mrb[31].mxu0  ;;  %1105 = vmatpush3.bf16.msra.mxu1 %v1387_v53 }
 0x16a   :  { %v1106_v45 = vpack.c.bf16 %v564_v38, %v563_v40  ;;  %v367_v47 = vadd.f32 %v1339_v25, %v366_v43 }
 0x16b   :  { %v566_v48 = vmax.f32 %v372_v22, 0.0 }
 0x16c   :  { %v565_v49 = vmax.f32 %v367_v47, 0.0  ;;  %1107 = vmatprep.subr.bf16.mxu1 %v1106_v45  ;;  %v1004_v50 = vpop.f32.mrb[32].mxu0 }
 0x16d   :  { %v382_v37 = vadd.f32 %v1004_v50, %v1339_v25  ;;  %1109 = vmatpush3.bf16.msra.mxu1 %v1395_v5  ;;  %v376_v51 = vpop.f32.mrb[33].mxu0  ;;  %v602_v5 = vld [vmem:[#allocation7 + $0x18] sm:$0xff] }
 0x16e   :  { %v1110_v52 = vpack.c.bf16 %v566_v48, %v565_v49  ;;  %v377_v54 = vadd.f32 %v1339_v25, %v376_v51 }
 0x16f   :  { %v568_v56 = vmax.f32 %v382_v37, 0.0 }
 0x170   :  { %v567_v57 = vmax.f32 %v377_v54, 0.0  ;;  %1111 = vmatprep.subr.bf16.mxu1 %v1110_v52  ;;  %v1007_v59 = vpop.f32.mrb[34].mxu0 }
 0x171   :  { %v392_v53 = vadd.f32 %v1007_v59, %v1339_v25  ;;  %1113 = vmatpush3.bf16.msra.mxu1 %v1403_v21  ;;  %v386_v61 = vpop.f32.mrb[35].mxu0 }
 0x172   :  { %v1116_v0 = vpack.c.bf16 %v568_v56, %v567_v57  ;;  %v387_v1 = vadd.f32 %v1339_v25, %v386_v61  ;;  %1115 = vmatprep.subr.bf16.mxu1 %v1374_v24 }
 0x173   :  { %v570_v2 = vmax.f32 %v392_v53, 0.0 }
 0x174   :  { %v569_v3 = vmax.f32 %v387_v1, 0.0  ;;  %v1010_v4 = vpop.f32.mrb[36].mxu0  ;;  %668 = vmatmul.mubr.f32.vlgmr.msra.gmra.mrb[22].mxu1 %v599_v63 }
 0x175   :  { %v402_v6 = vadd.f32 %v1010_v4, %v1339_v25  ;;  %1117 = vmatpush3.bf16.msra.mxu1 %v1116_v0  ;;  %v396_v9 = vpop.f32.mrb[37].mxu0  ;;  %737 = vmatprep.mubr.f32.mxu1 %v602_v5 }
 0x176   :  { %v1120_v44 = vpack.c.bf16 %v570_v2, %v569_v3  ;;  %v397_v21 = vadd.f32 %v1339_v25, %v396_v9  ;;  %1119 = vmatprep.subr.bf16.mxu1 %v1382_v39 }
 0x177   :  { %v572_v11 = vmax.f32 %v402_v6, 0.0 }
 0x178   :  { %v571_v13 = vmax.f32 %v397_v21, 0.0  ;;  %v1013_v14 = vpop.f32.mrb[38].mxu0 }
 0x179   :  { %v412_v24 = vadd.f32 %v1013_v14, %v1339_v25  ;;  %1121 = vmatpush3.bf16.msra.mxu1 %v1120_v44  ;;  %v406_v15 = vpop.f32.mrb[39].mxu0 }
 0x17a   :  { %v1124_v16 = vpack.c.bf16 %v572_v11, %v571_v13  ;;  %v407_v17 = vadd.f32 %v1339_v25, %v406_v15  ;;  %1123 = vmatprep.subr.bf16.mxu1 %v1390_v55 }
 0x17b   :  { %v574_v18 = vmax.f32 %v412_v24, 0.0 }
 0x17c   :  { %v573_v19 = vmax.f32 %v407_v17, 0.0  ;;  %v1016_v20 = vpop.f32.mrb[40].mxu0 }
 0x17d   :  { %v422_v23 = vadd.f32 %v1016_v20, %v1339_v25  ;;  %1125 = vmatpush3.bf16.msra.mxu1 %v1124_v16  ;;  %v416_v58 = vpop.f32.mrb[41].mxu0 }
 0x17e   :  { %v1128_v39 = vpack.c.bf16 %v574_v18, %v573_v19  ;;  %v417_v27 = vadd.f32 %v1339_v25, %v416_v58  ;;  %1127 = vmatprep.subr.bf16.mxu1 %v1398_v7  ;;  %v601_v25 = vld [vmem:[#allocation7 + $0x10] sm:$0xff] }
 0x17f   :  { %v576_v28 = vmax.f32 %v422_v23, 0.0 }
 0x180   :  { %v575_v29 = vmax.f32 %v417_v27, 0.0 }
 0x181   :  { %1129 = vmatpush3.bf16.msra.mxu1 %v1128_v39 }
 0x182   :  { %v1132_v30 = vpack.c.bf16 %v576_v28, %v575_v29  ;;  %1131 = vmatprep.subr.bf16.mxu1 %v1406_v26 }
 0x185   :  { %1133 = vmatpush3.bf16.msra.mxu1 %v1132_v30 }
 0x186   :  { %1135 = vmatprep.subr.bf16.mxu1 %v1412_v42 }
 0x189   :  { %1137 = vmatpush3.bf16.msra.mxu1 %v1350_v46 }
 0x18a   :  { %1139 = vmatprep.subr.bf16.mxu1 %v1419_v62 }
 0x18d   :  { %1141 = vmatpush3.bf16.msra.mxu1 %v1358_v60 }
 0x18e   :  { %1143 = vmatprep.subr.bf16.mxu1 %v1425_v12 }
 0x191   :  { %1145 = vmatpush3.bf16.msra.mxu1 %v1366_v10 }
 0x194   :  { %738 = vmatmul.mubr.f32.vlgmr.msra.gmra.mrb[24].mxu1 %v601_v25 }
 0x247   :  { %v884_v55 = vpop.f32.mrb[22].mxu1 }
 0x248   :  { %v885_v7 = vpop.f32.mrb[23].mxu1 }
 0x249   :  { %v886_v31 = vadd.f32 %v885_v7, %v884_v55 }
 0x267   :  { %v919_v32 = vpop.f32.mrb[24].mxu1 }
 0x268   :  { %v920_v26 = vpop.f32.mrb[25].mxu1 }
 0x269   :  { %v921_v42 = vadd.f32 %v920_v26, %v919_v32 }
 0x26b   :  { %v740_v33 = vadd.f32 %v921_v42, %v886_v31 }
 0x26d   :  { %747 = vst [vmem:[#allocation8] sm:$0xff] %v740_v33 }
 0x26e   :  { %1245 = shalt.err (!%p1242_p0)
}
 0x26f   :  { %s1246_s30 = scalar_lea.hbm %s1478_s4, 128 }
 0x270   :  { %p1247_p1 = scmp.ne.s32.totalorder %s1478_s4, %s1246_s30  ;;  %p1250_p2 = scmp.lt.u32.totalorder %s1246_s30, %s1478_s4 }
 0x272   :  { %p1252_p3 = pnand %p1250_p2, %p1247_p1 }
 0x274   :  { %1255 = shalt.err (!%p1252_p3)
}
 0x275   :  { %764 = dma.vmem_to_hbm [thread:$0]  %s762_s26, 128, %s1478_s4, [#allocation4]  }
 0x276   :  { %1260 = dma.done.wait [#allocation4], 128  }
 0x277   :  { %1261 = vsyncadd [#allocation4], 4294967168 }
 0x278   :  { %768 = vsyncpa [#allocation3], 1 }
 0x279   :  { %769 = vsyncpa [#allocation6], 1 }
 0x27a   :  { %770 = vsyncpa [#allocation4], 1 }

</bundles_post_ra>
